<compile_context>
chip_gen: v5e
topology: v5e:2x2
jax: 0.10.0
libtpu: 0.0.40
codegen_flags: <defaults>
</compile_context>

<pallas_src>
import functools

import jax
import jax.numpy as jnp
from jax.experimental import pallas as pl
from jax.experimental.pallas import tpu as pltpu

BETA = 0.9
INPUT_DIM = 3
HIDDEN_DIM = 20
OUTPUT_DIM = 1

_MAX_BATCH_TILE = 32768  # multiple of 512; ~7-8 MiB/step VMEM incl. double-buffering


def _mlp_kernel(w1_ref, b1_ref, w2s_ref, xt_ref, ot_ref):
    # fc1 with batch on lanes: (hid, in) @ (in, TB) -> (hid, TB)
    h = jnp.dot(w1_ref[...], xt_ref[...], preferred_element_type=jnp.float32)
    h = jnp.maximum(h + b1_ref[...], 0.0)           # bias (hid, 1) broadcasts over lanes
    # fc2 (output scale pre-folded into w2s): (out, hid) @ (hid, TB) -> (out, TB)
    # Lane-dense output tile -> unmasked stores.
    ot_ref[...] = jnp.dot(
        w2s_ref[...], h, preferred_element_type=jnp.float32
    ).astype(ot_ref.dtype)


def prepare_params(w1, b1, w2, *, beta=BETA):
    """One-time parameter prep (hoisted out of the per-call path).

    w1: (hidden, in)   -- PyTorch fc1.weight layout (already what the kernel wants)
    b1: (hidden,)      -- PyTorch fc1.bias
    w2: (out, hidden)  -- PyTorch fc2.weight layout (already what the kernel wants)
    Folds the 1/hidden**beta output scale into w2.
    """
    hidden_dim = w1.shape[0]
    scale = 1.0 / (float(hidden_dim) ** beta)
    w1p = jnp.asarray(w1, jnp.float32)                  # (hid, in)
    b1p = jnp.asarray(b1, jnp.float32)[:, None]         # (hid, 1)
    w2p = jnp.asarray(w2, jnp.float32) * scale          # (out, hid), scale folded in
    return w1p, b1p, w2p


def _round_up(x, m):
    return ((x + m - 1) // m) * m


def _choose_batch_tile(B, batch_tile):
    """Pick the lane-axis (batch) tile size.  Static (shape-derived) value."""
    if batch_tile is not None:
        return batch_tile
    if B <= 128:
        # Tiny batch (e.g. demo): minimum lane tile; mostly padding anyway.
        return 128
    if B <= 256:
        return 256
    # Large batch: big tiles so per-step DMA bytes dominate the ~0.35us/step
    # overhead.  Cap keeps per-step VMEM (double-buffered x/out tiles + the
    # (hid, tb) intermediate) well under v7x's 32 MiB default scoped VMEM.
    tb = min(_round_up(B, 512), _MAX_BATCH_TILE)
    # Keep >= 2 grid steps so v7x megacore ('parallel' axis) uses both TCs.
    if _round_up(B, tb) // tb < 2 and tb > 512:
        half = _round_up(pl.cdiv(B, 2), 512)
        tb = max(half, 512)
    return tb


def _mlp_pallas(xt, w1p, b1p, w2p, tb):
    """Core pallas_call.  xt: (in_dim, padded_B) f32, padded_B % tb == 0."""
    in_dim, padded_B = xt.shape
    hid = w1p.shape[0]
    out_dim = w2p.shape[0]
    grid = (padded_B // tb,)

    flops = 2 * padded_B * (in_dim * hid + hid * out_dim)
    bytes_accessed = 4 * (
        padded_B * (in_dim + out_dim) + in_dim * hid + hid + hid * out_dim
    )

    return pl.pallas_call(
        _mlp_kernel,
        out_shape=jax.ShapeDtypeStruct((out_dim, padded_B), jnp.float32),
        grid=grid,
        in_specs=[
            pl.BlockSpec((hid, in_dim), lambda i: (0, 0)),   # W1, resident
            pl.BlockSpec((hid, 1), lambda i: (0, 0)),        # b1, resident
            pl.BlockSpec((out_dim, hid), lambda i: (0, 0)),  # scale*W2, resident
            pl.BlockSpec((in_dim, tb), lambda i: (0, i)),    # x^T batch tile (streamed)
        ],
        out_specs=pl.BlockSpec((out_dim, tb), lambda i: (0, i)),
        compiler_params=pltpu.CompilerParams(
            dimension_semantics=("parallel",),
        ),
        cost_estimate=pl.CostEstimate(
            flops=flops, bytes_accessed=bytes_accessed, transcendentals=0
        ),
    )(w1p, b1p, w2p, xt)


@functools.partial(jax.jit, static_argnames=("batch_tile",))
def nn_forward_feature_major(xt, w1p, b1p, w2p, *, batch_tile=None):
    """Preferred entry point: x already feature-major, xt: (in_dim, B) f32.

    Avoids any wrapper-side transpose of the dominant input.  Returns
    (out_dim, B) with the padded garbage columns sliced off (padded columns go
    through relu(b1) and are NOT zero inside the kernel output).
    """
    _, B = xt.shape
    tb = _choose_batch_tile(B, batch_tile)
    padded_B = pl.cdiv(B, tb) * tb
    xt = xt.astype(jnp.float32)
    if padded_B != B:
        xt = jnp.pad(xt, ((0, 0), (0, padded_B - B)))
    ot = _mlp_pallas(xt, w1p, b1p, w2p, tb)
    return ot[:, :B]


@functools.partial(jax.jit, static_argnames=("batch_tile",))
def nn_forward_prepared(x, w1p, b1p, w2p, *, batch_tile=None):
    """Forward with pre-prepared params.  x: (B, in) f32 -> (B, out) f32."""
    B = x.shape[0]
    tb = _choose_batch_tile(B, batch_tile)
    padded_B = pl.cdiv(B, tb) * tb
    # Single fused pad+transpose expression (one HBM pass over x), instead of
    # a transpose followed by a separate pad.
    xt = jnp.transpose(
        jnp.pad(x.astype(jnp.float32), ((0, padded_B - B), (0, 0)))
    )
    ot = _mlp_pallas(xt, w1p, b1p, w2p, tb)
    # (out, padded_B) -> (B, out): slice off padding (garbage cols), transpose back.
    return jnp.transpose(ot[:, :B])


def nn_forward(x, w1, b1, w2, *, beta=BETA, batch_tile=None):
    """Convenience wrapper taking PyTorch-layout params directly."""
    w1p, b1p, w2p = prepare_params(w1, b1, w2, beta=beta)
    return nn_forward_prepared(x, w1p, b1p, w2p, batch_tile=batch_tile)


def _reference(x, w1, b1, w2, beta=BETA):
    hid = w1.shape[0]
    return (1.0 / (hid ** beta)) * (jnp.maximum(x @ w1.T + b1, 0.0) @ w2.T)


if __name__ == "__main__":
    key = jax.random.PRNGKey(0)
    k_x, k_w1, k_b1, k_w2, k_xl = jax.random.split(key, 5)

    # Deterministic parameter init mirroring _initialize_weights():
    #   fc1.weight ~ N(0, 1), fc1.bias ~ N(0, 1), fc2.weight ~ U(-1, 1)
    w1 = jax.random.normal(k_w1, (HIDDEN_DIM, INPUT_DIM), dtype=jnp.float32)
    b1 = jax.random.normal(k_b1, (HIDDEN_DIM,), dtype=jnp.float32)
    w2 = jax.random.uniform(
        k_w2, (OUTPUT_DIM, HIDDEN_DIM), minval=-1.0, maxval=1.0, dtype=jnp.float32
    )
    w1p, b1p, w2p = prepare_params(w1, b1, w2)

    # Small demo batch (matches the gradient-check script scale).
    B_small = 8
    x_small = jax.random.normal(k_x, (B_small, INPUT_DIM), dtype=jnp.float32)
    out_small = jax.block_until_ready(nn_forward_prepared(x_small, w1p, b1p, w2p))
    ref_small = _reference(x_small, w1, b1, w2)
    assert out_small.shape == (B_small, OUTPUT_DIM)
    assert jnp.allclose(out_small, ref_small, atol=1e-5, rtol=1e-5)

    # Larger, non-tile-aligned batch: exercises the big-tile / multi-step grid
    # path and the feature-major (no-transpose) entry point.
    B_large = 3000
    x_large = jax.random.normal(k_xl, (B_large, INPUT_DIM), dtype=jnp.float32)
    out_large_t = jax.block_until_ready(
        nn_forward_feature_major(x_large.T, w1p, b1p, w2p)
    )
    ref_large = _reference(x_large, w1, b1, w2)
    assert out_large_t.shape == (OUTPUT_DIM, B_large)
    assert jnp.allclose(out_large_t.T, ref_large, atol=1e-5, rtol=1e-5)

    print("KERNEL_OK")
</pallas_src>

<mosaic_0001>
module attributes {stable_mosaic.version = 11 : i64} {
  func.func @_mlp_kernel(%arg0: i32, %arg1: memref<20x3xf32, #tpu.memory_space<vmem>>, %arg2: memref<20x1xf32, #tpu.memory_space<vmem>>, %arg3: memref<1x20xf32, #tpu.memory_space<vmem>>, %arg4: memref<3x128xf32, #tpu.memory_space<vmem>>, %arg5: memref<1x128xf32, #tpu.memory_space<vmem>>) attributes {dimension_semantics = [#tpu.dimension_semantics<parallel>], iteration_bounds = array<i64: 1>, scalar_prefetch = 0 : i64, scratch_operands = 0 : i64, tpu.core_type = #tpu.core_type<tc>, window_params = [{pipeline_mode = #tpu.pipeline_mode<synchronous>, transform_indices = @transform_0, window_bounds = array<i64: 20, 3>}, {pipeline_mode = #tpu.pipeline_mode<synchronous>, transform_indices = @transform_1, window_bounds = array<i64: 20, 1>}, {pipeline_mode = #tpu.pipeline_mode<synchronous>, transform_indices = @transform_2, window_bounds = array<i64: 1, 20>}, {transform_indices = @transform_3, window_bounds = array<i64: 3, 128>}, {transform_indices = @transform_4, window_bounds = array<i64: 1, 128>}]} {
    %c0 = arith.constant 0 : index
    %c0_0 = arith.constant 0 : index
    %0 = vector.load %arg1[%c0, %c0_0] : memref<20x3xf32, #tpu.memory_space<vmem>>, vector<20x3xf32>
    %c0_1 = arith.constant 0 : index
    %c0_2 = arith.constant 0 : index
    %1 = vector.load %arg4[%c0_1, %c0_2] : memref<3x128xf32, #tpu.memory_space<vmem>>, vector<3x128xf32>
    %cst = arith.constant dense<0.000000e+00> : vector<20x128xf32>
    %2 = tpu.matmul %0, %1, %cst {dimension_numbers = #tpu.dot_dimension_numbers<[1], [0], [0], [1], [0, 0, 1, 1], [], []>} : vector<20x3xf32>, vector<3x128xf32>, vector<20x128xf32> -> vector<20x128xf32>
    %c0_3 = arith.constant 0 : index
    %c0_4 = arith.constant 0 : index
    %3 = vector.load %arg2[%c0_3, %c0_4] : memref<20x1xf32, #tpu.memory_space<vmem>>, vector<20x1xf32>
    %4 = vector.broadcast %3 : vector<20x1xf32> to vector<20x128xf32>
    %5 = arith.addf %2, %4 : vector<20x128xf32>
    %cst_5 = arith.constant 0.000000e+00 : f32
    %6 = vector.broadcast %cst_5 : f32 to vector<20x128xf32>
    %7 = arith.maximumf %5, %6 : vector<20x128xf32>
    %c0_6 = arith.constant 0 : index
    %c0_7 = arith.constant 0 : index
    %8 = vector.load %arg3[%c0_6, %c0_7] : memref<1x20xf32, #tpu.memory_space<vmem>>, vector<1x20xf32>
    %cst_8 = arith.constant dense<0.000000e+00> : vector<1x128xf32>
    %9 = tpu.matmul %8, %7, %cst_8 {dimension_numbers = #tpu.dot_dimension_numbers<[1], [0], [0], [1], [0, 0, 1, 1], [], []>} : vector<1x20xf32>, vector<20x128xf32>, vector<1x128xf32> -> vector<1x128xf32>
    %c0_9 = arith.constant 0 : index
    %c0_10 = arith.constant 0 : index
    %10 = vector.load %arg5[%c0_9, %c0_10] : memref<1x128xf32, #tpu.memory_space<vmem>>, vector<1x128xf32>
    tpu.vector_store %arg5[%c0_9, %c0_10], %9 {strides = array<i32>} : memref<1x128xf32, #tpu.memory_space<vmem>>, vector<1x128xf32>,
    return
  }
  func.func @transform_0(%arg0: i32) -> (i32, i32) {
    %c0_i32 = arith.constant 0 : i32
    %c0_i32_0 = arith.constant 0 : i32
    %c0_i32_1 = arith.constant 0 : i32
    return %c0_i32, %c0_i32_0 : i32, i32
  }
  func.func @transform_1(%arg0: i32) -> (i32, i32) {
    %c0_i32 = arith.constant 0 : i32
    %c0_i32_0 = arith.constant 0 : i32
    %c0_i32_1 = arith.constant 0 : i32
    return %c0_i32, %c0_i32_0 : i32, i32
  }
  func.func @transform_2(%arg0: i32) -> (i32, i32) {
    %c0_i32 = arith.constant 0 : i32
    %c0_i32_0 = arith.constant 0 : i32
    %c0_i32_1 = arith.constant 0 : i32
    return %c0_i32, %c0_i32_0 : i32, i32
  }
  func.func @transform_3(%arg0: i32) -> (i32, i32) {
    %c0_i32 = arith.constant 0 : i32
    %c0_i32_0 = arith.constant 0 : i32
    return %c0_i32, %arg0 : i32, i32
  }
  func.func @transform_4(%arg0: i32) -> (i32, i32) {
    %c0_i32 = arith.constant 0 : i32
    %c0_i32_0 = arith.constant 0 : i32
    return %c0_i32, %arg0 : i32, i32
  }
}

</mosaic_0001>

<bundles_post_ra>
// kernel: nn_forward_prepared.1
= control target key start
LH: loop header
LB: loop body
LE: loop exit
PB: predicated region body
PF: predicated region fallthrough
CT: control target
= control target key end

     0   :  { %vm49_vm0 = vcmask 1042432   ;;  %vm39_vm1 = vcmask 23552   ;;  %v127_v3 = vmov 0   ;;  %vm87_vm2 = vcmask 1043456   ;;  %s186_s3 = inlined_call_operand.vmem [shape: f32[3,128], index: 3, kind: input, shape index: {}]   ;;  %s187_s0 = inlined_call_operand.vmem [shape: f32[20,3], index: 0, kind: input, shape index: {}]   ;;  %s188_s1 = inlined_call_operand.vmem [shape: f32[20,1], index: 1, kind: input, shape index: {}]   ;;  %s189_s2 = inlined_call_operand.vmem [shape: f32[1,20], index: 2, kind: input, shape index: {}]   ;;  %s190_s4 = inlined_call_operand.vmem [shape: f32[1,128], index: 4, kind: output, shape index: {}]  }
   0x1   :  { %v20_v0 = vld [vmem:[%s186_s3] sm:$0x7]  ;;  %v18_v1 = vld [vmem:[%s187_s0 + $0x8] sm:$0xff]  ;;  %v19_v2 = vld [vmem:[%s187_s0 + $0x10] sm:$0xf]  ;;  %125 = vset.pattern.permute.xlu0 %v127_v3  ;;  %126 = vset.pattern.permute.xlu1 %v127_v3  ;;  %vm83_vm3 = vcmask 162816  }
   0x2   :  { %122 = vmatpush.msk.msra.mxu2 %vm49_vm0, %v20_v0  ;;  %123 = vmatpush.msk.msra.mxu3 %vm49_vm0, %v20_v0  ;;  %v23_v4 = vld [vmem:[%s188_s1 + $0x10] sm:$0xf]  ;;  %v17_v5 = vld [vmem:[%s187_s0] sm:$0xff]  ;;  %v22_v7 = vld [vmem:[%s188_s1 + $0x8] sm:$0xff] }
   0x3   :  { %118 = vmatmul.msk.f32.vlgmr.msra.gmra.mxu2 %vm39_vm1, %v18_v1  ;;  %119 = vmatmul.msk.f32.vlgmr.msra.gmra.mxu3 %vm39_vm1, %v19_v2  ;;  %v21_v6 = vld [vmem:[%s188_s1] sm:$0xff] }
   0x4   :  { %36 = vperm.xlu0 %125, %v23_v4   ;;  %116 = vmatpush.msk.msra.mxu0 %vm49_vm0, %v20_v0  ;;  %v82_v20 = vld [vmem:[%s189_s2] sm:$0x1] }
   0x5   :  { %117 = vmatmul.msk.f32.vlgmr.msra.gmra.mxu0 %vm39_vm1, %v17_v5  ;;  %26 = vperm.xlu1 %126, %v21_v6  }
   0xc   :  { %31 = vperm.xlu0 %125, %v22_v7  }
  0x76   :  { %v37_v8 = vpop.permute.xlu0 %36 }
  0x77   :  { %v27_v9 = vpop.permute.xlu1 %26 }
  0x7e   :  { %v32_v11 = vpop.permute.xlu0 %31 }
  0x82   :  { %v70_v10 = vpop.f32.mrf.mxu0 }
  0x83   :  { %v71_v16 = vadd.f32 %v70_v10, %v27_v9 }
  0x85   :  { %v79_v19 = vmax.f32 %v71_v16, 0.0 }
  0x86   :  { %v73_v12 = vpop.f32.mrf.mxu2  ;;  %v76_v13 = vpop.f32.mrf.mxu3 }
  0x87   :  { %v74_v14 = vadd.f32 %v73_v12, %v32_v11  ;;  %v77_v15 = vadd.f32 %v76_v13, %v37_v8 }
  0x89   :  { %v81_v17 = vmax.f32 %v77_v15, 0.0  ;;  %v80_v18 = vmax.f32 %v74_v14, 0.0 }
  0x8b   :  { %120 = vmatpush.msk.msra.mxu1 %vm87_vm2, %v81_v17 }
  0x8d   :  { %105 = vmatpush.msra.mxu1 %v80_v18 }
  0x8f   :  { %106 = vmatpush.msra.mxu1 %v79_v19 }
  0x90   :  { %121 = vmatmul.msk.f32.vlgmr.msra.gmra.mxu1 %vm83_vm3, %v82_v20 }
 0x10d   :  { %v108_v21 = vpop.f32.mrf.mxu1 }
 0x10e   :  { %111 = vst [vmem:[%s190_s4] sm:$0x1] %v108_v21 }

</bundles_post_ra>
